<compile_context>
chip_gen: v6e
topology: v6e:2x2x1
jax: 0.10.0
libtpu: 0.0.40
codegen_flags: <defaults>
</compile_context>

<pallas_src>
import jax
import jax.numpy as jnp
from jax import lax
from jax.experimental import pallas as pl
from jax.experimental.pallas import tpu as pltpu


def _nextstep_kernel(x_ref, f_ref, o_ref):
    # x_ref: (TB, XDim) row tile of X   (contiguous rows straight from HBM)
    # f_ref: (XDim, XDim) transition matrix, resident in VMEM (constant index_map)
    # o_ref: (TB, XDim) row tile of NextX = X @ F.T
    #
    # Contract x's last dim against F's last dim so no transpose op is needed:
    #   out[b, j] = sum_k x[b, k] * F[j, k]   ==  (F @ x_b)[j]
    o_ref[...] = lax.dot_general(
        x_ref[...],
        f_ref[...],
        dimension_numbers=(((1,), (1,)), ((), ())),
        preferred_element_type=jnp.float32,
    ).astype(o_ref.dtype)


def _round_up(n, m):
    return ((n + m - 1) // m) * m


def _choose_tile(B, tb_max):
    """Pick the row-tile size.

    * B <= tb_max: one full-extent block (no divisibility constraint).
    * Otherwise: a multiple of 16 (valid for f32 and bf16 sublane tiling),
      capped at tb_max, but shrunk toward ceil(B/4) (>= 1024-row floor) so the
      grid has ~4+ steps and v7x's two TensorCores get balanced work.
    """
    if B <= tb_max:
        return B
    tb = max(1024, _round_up(pl.cdiv(B, 4), 16))
    return min(tb_max, tb)


def base_movement_forward(x, F, *, tb=8192, donate=False,
                          min_pallas_bytes=256 * 1024):
    """NextX = X @ F.T via a row-tiled Pallas kernel (no HBM-side transposes).

    x:  (..., XDim) state vectors (any leading batch dims; kept in x.dtype —
        pass bf16 state to halve HBM traffic of this memory-bound op).
    F:  (XDim, XDim) transition matrix (cast to x.dtype; f32 accumulation).
    tb: max rows per tile (multiple of 16).  VMEM use ~= tb * 2 KiB (f32).
    donate: alias the caller's X buffer with the output (in-place propagate).
    min_pallas_bytes: below this input size, fall back to plain XLA x @ F.T
        (a pallas_call dispatch costs more than the math at tiny B).
    """
    orig_shape = x.shape
    XDim = x.shape[-1]
    assert F.shape == (XDim, XDim)
    assert tb % 16 == 0

    x2 = x.reshape(-1, XDim)          # row-major reshape: no data movement
    B = x2.shape[0]
    F = F.astype(x2.dtype)            # tiny (XDim^2); keeps pipeline in x.dtype
    itemsize = jnp.dtype(x2.dtype).itemsize

    # Small-B fast path: dispatch overhead would dominate the math.
    if B * XDim * itemsize < min_pallas_bytes:
        return (x2 @ F.T).reshape(orig_shape)

    TB = _choose_tile(B, tb)
    grid = (pl.cdiv(B, TB),)
    # Partial tail blocks compute on unspecified OOB rows that are then
    # discarded by the masked writeback — safe because rows are independent.

    cost = pl.CostEstimate(
        flops=2 * B * XDim * XDim,
        transcendentals=0,
        bytes_accessed=(2 * B * XDim + XDim * XDim) * itemsize,
    )

    out = pl.pallas_call(
        _nextstep_kernel,
        out_shape=jax.ShapeDtypeStruct((B, XDim), x2.dtype),
        grid=grid,
        in_specs=[
            pl.BlockSpec((TB, XDim), lambda i: (i, 0)),     # contiguous row tile of X
            pl.BlockSpec((XDim, XDim), lambda i: (0, 0)),   # F resident in VMEM
        ],
        out_specs=pl.BlockSpec((TB, XDim), lambda i: (i, 0)),
        compiler_params=pltpu.CompilerParams(
            dimension_semantics=("parallel",),              # megacore-friendly
            vmem_limit_bytes=32 * 1024 * 1024,              # covers v5e's 16 MiB default
        ),
        cost_estimate=cost,
        input_output_aliases={0: 0} if donate else {},
    )(x2, F)

    return out.reshape(orig_shape)


class BaseMovementModelPallas:
    """JAX/Pallas mirror of the PyTorch BaseMovementModel (forward path only)."""

    def __init__(self, XDim=9, QDim=9):
        self.XDim = XDim
        self.QDim = QDim
        # Deterministic parameter init, matching the PyTorch __init__:
        self.F = jnp.eye(XDim, dtype=jnp.float32)
        self.Q = jnp.eye(QDim, dtype=jnp.float32)
        self.G = jnp.zeros((XDim, QDim), dtype=jnp.float32)
        if XDim == QDim:
            self.G = jnp.eye(XDim, dtype=jnp.float32)
        self.sqrtQ = jnp.linalg.cholesky(self.Q)
        # TODO(synk): nextstepCpu / nextstepGeneral sample Gaussian process
        # noise (torch.distributions / torch.randn); not part of forward(), so
        # only the deterministic F @ X propagation is implemented in Pallas.

    def __call__(self, X, **kwargs):
        return base_movement_forward(X, self.F, **kwargs)


if __name__ == "__main__":
    key = jax.random.PRNGKey(0)
    k1, k2, k3, k4 = jax.random.split(key, 4)

    XDim = 9
    model = BaseMovementModelPallas(XDim=XDim, QDim=XDim)

    # 1) Small batch, identity F: exercises the small-B XLA fast path ...
    x_small = jax.random.normal(k1, (8, XDim), dtype=jnp.float32)
    out_small = jax.block_until_ready(model(x_small))
    assert out_small.shape == (8, XDim)
    assert jnp.allclose(out_small, x_small @ model.F.T, atol=1e-5, rtol=1e-5)

    # ... and forced through the Pallas kernel (single full-extent block).
    out_small_k = jax.block_until_ready(model(x_small, min_pallas_bytes=0))
    assert jnp.allclose(out_small_k, x_small @ model.F.T, atol=1e-5, rtol=1e-5)

    # 2) Non-trivial F, B large enough for a multi-step grid (>=4 steps) with a
    #    partial tail block.
    F_big = jnp.eye(XDim, dtype=jnp.float32) + 0.05 * jax.random.normal(
        k2, (XDim, XDim), dtype=jnp.float32
    )
    x_big = jax.random.normal(k3, (20000, XDim), dtype=jnp.float32)
    out_big = jax.block_until_ready(
        base_movement_forward(x_big, F_big, min_pallas_bytes=0)
    )
    assert out_big.shape == (20000, XDim)
    assert jnp.allclose(out_big, x_big @ F_big.T, atol=1e-4, rtol=1e-4)

    # 3) Small tile override -> 3 grid steps with an explicit partial tail.
    x_mid = jax.random.normal(k4, (3000, XDim), dtype=jnp.float32)
    out_mid = jax.block_until_ready(
        base_movement_forward(x_mid, F_big, tb=1024, min_pallas_bytes=0)
    )
    assert out_mid.shape == (3000, XDim)
    assert jnp.allclose(out_mid, x_mid @ F_big.T, atol=1e-4, rtol=1e-4)

    # 4) bf16 state end-to-end (caller stores X in bf16 -> halved HBM traffic).
    x_bf16 = x_small.astype(jnp.bfloat16)
    out_bf16 = jax.block_until_ready(
        base_movement_forward(x_bf16, F_big, min_pallas_bytes=0)
    )
    assert out_bf16.dtype == jnp.bfloat16
    ref_bf16 = x_bf16.astype(jnp.float32) @ F_big.T
    assert jnp.allclose(
        out_bf16.astype(jnp.float32), ref_bf16, atol=5e-2, rtol=5e-2
    )

    print("KERNEL_OK")
</pallas_src>

<mosaic_0001>
module attributes {stable_mosaic.version = 11 : i64} {
  func.func @_nextstep_kernel(%arg0: i32, %arg1: memref<8x9xf32, #tpu.memory_space<vmem>>, %arg2: memref<9x9xf32, #tpu.memory_space<vmem>>, %arg3: memref<8x9xf32, #tpu.memory_space<vmem>>) attributes {dimension_semantics = [#tpu.dimension_semantics<parallel>], iteration_bounds = array<i64: 1>, scalar_prefetch = 0 : i64, scratch_operands = 0 : i64, tpu.core_type = #tpu.core_type<tc>, window_params = [{transform_indices = @transform_0, window_bounds = array<i64: 8, 9>}, {pipeline_mode = #tpu.pipeline_mode<synchronous>, transform_indices = @transform_1, window_bounds = array<i64: 9, 9>}, {transform_indices = @transform_2, window_bounds = array<i64: 8, 9>}]} {
    %c0 = arith.constant 0 : index
    %c0_0 = arith.constant 0 : index
    %0 = vector.load %arg1[%c0, %c0_0] : memref<8x9xf32, #tpu.memory_space<vmem>>, vector<8x9xf32>
    %c0_1 = arith.constant 0 : index
    %c0_2 = arith.constant 0 : index
    %1 = vector.load %arg2[%c0_1, %c0_2] : memref<9x9xf32, #tpu.memory_space<vmem>>, vector<9x9xf32>
    %cst = arith.constant dense<0.000000e+00> : vector<8x9xf32>
    %2 = tpu.matmul %0, %1, %cst {dimension_numbers = #tpu.dot_dimension_numbers<[1], [1], [0], [0], [0, 0, 1, 0], [], []>} : vector<8x9xf32>, vector<9x9xf32>, vector<8x9xf32> -> vector<8x9xf32>
    %c0_3 = arith.constant 0 : index
    %c0_4 = arith.constant 0 : index
    %3 = vector.load %arg3[%c0_3, %c0_4] : memref<8x9xf32, #tpu.memory_space<vmem>>, vector<8x9xf32>
    tpu.vector_store %arg3[%c0_3, %c0_4], %2 {strides = array<i32>} : memref<8x9xf32, #tpu.memory_space<vmem>>, vector<8x9xf32>,
    return
  }
  func.func @transform_0(%arg0: i32) -> (i32, i32) {
    %c0_i32 = arith.constant 0 : i32
    %c0_i32_0 = arith.constant 0 : i32
    return %arg0, %c0_i32 : i32, i32
  }
  func.func @transform_1(%arg0: i32) -> (i32, i32) {
    %c0_i32 = arith.constant 0 : i32
    %c0_i32_0 = arith.constant 0 : i32
    %c0_i32_1 = arith.constant 0 : i32
    return %c0_i32, %c0_i32_0 : i32, i32
  }
  func.func @transform_2(%arg0: i32) -> (i32, i32) {
    %c0_i32 = arith.constant 0 : i32
    %c0_i32_0 = arith.constant 0 : i32
    return %arg0, %c0_i32 : i32, i32
  }
}

</mosaic_0001>

<bundles_post_ra>
// kernel: tpu_custom_call.1
= control target key start
LH: loop header
LB: loop body
LE: loop exit
PB: predicated region body
PF: predicated region fallthrough
CT: control target
= control target key end

     0   :  { %7 = vsyncpa [#allocation3], 0  ;;  %s255_s0 = inlined_call_operand.hbm [shape: f32[8,9], index: 0, kind: input, shape index: {}]   ;;  %s256_s1 = inlined_call_operand.hbm [shape: f32[9,9], index: 1, kind: input, shape index: {}]   ;;  %s257_s2 = inlined_call_operand.hbm [shape: f32[8,9], index: 2, kind: output, shape index: {}]  }
   0x1   :  { %8 = vsyncpa [#allocation6], 0 }
   0x2   :  { %9 = vsyncpa [#allocation4], 0  ;;  %s224_s9 = smov [#allocation2]   ;;  %s225_s11 = smov [#allocation5]  }
   0x3   :  { %s16_s10 = sshll.u32 %s224_s9, 4  ;;  %s25_s12 = sshll.u32 %s225_s11, 4  ;;  %s17_s10 = int_to_ptr.vmem [resolvable:$true] %s16_s10  ;;  %s26_s12 = int_to_ptr.vmem [resolvable:$true] %s25_s12 }
   0x4   :  { %s166_s13 = scalar_lea.vmem %s17_s10, 128  ;;  %p171_p1 = scmp.lt.s32.totalorder %s17_s10, %s17_s10 }
   0x5   :  { %p167_p0 = scmp.ne.s32.totalorder %s17_s10, %s166_s13  ;;  %p172_p2 = scmp.lt.s32.totalorder %s166_s13, %s166_s13 }
   0x7   :  { %p173_p3 = por %p172_p2, %p171_p1 }
   0x9   :  { %p174_p4 = pnand %p173_p3, %p167_p0 }
   0xb   :  { %177 = shalt.err (!%p174_p4)
}
   0xc   :  { %19 = dma.hbm_to_vmem [thread:$0]  %s255_s0, 128, %s17_s10, [#allocation3]  }
   0xd   :  { %s186_s16 = scalar_lea.vmem %s26_s12, 256  ;;  %p191_p6 = scmp.lt.s32.totalorder %s26_s12, %s26_s12 }
   0xe   :  { %p187_p5 = scmp.ne.s32.totalorder %s26_s12, %s186_s16  ;;  %p192_p7 = scmp.lt.s32.totalorder %s186_s16, %s186_s16 }
  0x10   :  { %p193_p8 = por %p192_p7, %p191_p6 }
  0x12   :  { %p194_p9 = pnand %p193_p8, %p187_p5 }
  0x14   :  { %197 = shalt.err (!%p194_p9)
}
  0x15   :  { %s226_s17 = smov 128   ;;  %s227_s18 = smov 8  }
  0x16   :  { %31 = dma.hbm_to_vmem [thread:$0]  %s256_s1, 256, %s26_s12, [#allocation6], %s226_s17, %s226_s17, %s227_s18  }
  0x17   :  { %218 = dma.done.wait [#allocation3], 128  }
  0x18   :  { %219 = vsyncadd [#allocation3], 4294967168 }
  0x19   :  { %220 = dma.done.wait [#allocation6], 256  }
  0x1a   :  { %221 = vsyncadd [#allocation6], 4294967040  ;;  %v228_v0 = vmov 0.0   ;;  %vm229_vm0 = vmmov 0   ;;  %vm41_vm1 = vcmask 72704   ;;  %v39_v2 = vld [vmem:[#allocation5] sm:$0xff] }
  0x1b   :  { %144 = vmatprep.subr.mxu0 %v228_v0  ;;  %148 = vmatprep.mubr.msk.f32.mxu0 %vm229_vm0, %v228_v0  ;;  %v40_v1 = vld [vmem:[#allocation5 + $0x8] sm:$0x1]  ;;  %v38_v3 = vld [vmem:[#allocation2] sm:$0xff]  ;;  %s230_s0 = smov [#allocation7]  }
  0x1c   :  { %145 = vmatpush3.xpose.msk.msra.mxu0 %vm41_vm1, %v40_v1  ;;  %s128_s21 = sshll.u32 %s230_s0, 4  ;;  %s129_s21 = int_to_ptr.vmem [resolvable:$true] %s128_s21 }
  0x1d   :  { %146 = vmatprep.subr.mxu0 %v228_v0  ;;  %s198_s1 = scalar_lea.vmem %s129_s21, 128  ;;  %p203_p11 = scmp.lt.s32.totalorder %s129_s21, %s129_s21 }
  0x1e   :  { %p199_p10 = scmp.ne.s32.totalorder %s129_s21, %s198_s1  ;;  %p204_p12 = scmp.lt.s32.totalorder %s198_s1, %s198_s1 }
  0x20   :  { %147 = vmatpush3.xpose.msk.msra.mxu0 %vm41_vm1, %v39_v2  ;;  %p205_p13 = por %p204_p12, %p203_p11 }
  0x22   :  { %p206_p0 = pnand %p205_p13, %p199_p10 }
  0x23   :  { %149 = vmatmul.mubr.msk.f32.vlgmr.msra.gmra.mxu0 %vm41_vm1, %v38_v3 }
  0xe3   :  { %v117_v4 = vpop.f32.mrf.mxu0 }
  0xe4   :  { %121 = vst.msk [vmem:[#allocation7] sm:$0xff] %vm41_vm1, %v117_v4 }
  0xe5   :  { %v150_v5 = vpop.f32.mrf.mxu0 }
  0xe6   :  { %209 = shalt.err (!%p206_p0)
}
  0xe7   :  { %131 = dma.vmem_to_hbm [thread:$0]  %s129_s21, 128, %s257_s2, [#allocation4]  }
  0xe8   :  { %222 = dma.done.wait [#allocation4], 128  }
  0xe9   :  { %223 = vsyncadd [#allocation4], 4294967168 }
  0xea   :  { %135 = vsyncpa [#allocation3], 1 }
  0xeb   :  { %136 = vsyncpa [#allocation6], 1 }
  0xec   :  { %137 = vsyncpa [#allocation4], 1 }

</bundles_post_ra>
